<compile_context>
chip_gen: v7x
topology: tpu7x:2x2x1
jax: 0.10.0
libtpu: 0.0.40
codegen_flags: <defaults>
</compile_context>

<pallas_src>
import math

import jax
import jax.numpy as jnp
import numpy as np
from jax.experimental import pallas as pl
from jax.experimental.pallas import tpu as pltpu


def _window_table(levels, H, W):
    """Static per-window geometry for every pyramid level.

    Returns a list of (bin_index, r0, r1, c0, c1, n_valid, window_area) where
    [r0:r1, c0:c1] is the intersection of the (padded-coordinate) pooling
    window with the un-padded image. Padding value is 0 for both modes.
    """
    table = []
    bin_idx = 0
    for L in levels:
        hk = int(math.ceil(H / L))
        wk = int(math.ceil(W / L))
        h1 = (hk * L - H) // 2  # floor, matches F.pad centering in the module
        w1 = (wk * L - W) // 2
        for li in range(L):
            for lj in range(L):
                r0 = max(0, li * hk - h1)
                r1 = min(H, (li + 1) * hk - h1)
                c0 = max(0, lj * wk - w1)
                c1 = min(W, (lj + 1) * wk - w1)
                nv = max(0, r1 - r0) * max(0, c1 - c0)
                table.append((bin_idx, r0, r1, c0, c1, nv, hk * wk))
                bin_idx += 1
    return table, bin_idx


def _make_spp_kernel(levels, mode, H, W):
    windows, _ = _window_table(levels, H, W)

    def kernel(x_ref, o_ref):
        # x_ref: (1, H, W, Ct)  channels on lanes
        # o_ref: (1, total_bins, Ct)  lane-dense rows, one per pooling window
        ct = x_ref.shape[-1]
        for (b, r0, r1, c0, c1, nv, area) in windows:
            if nv == 0:
                # Window lies entirely inside the zero padding.
                v = jnp.zeros((1, ct), dtype=o_ref.dtype)
                o_ref[0, b:b + 1, :] = v
                continue
            win = x_ref[0, r0:r1, c0:c1, :]  # (dh, dw, Ct), static slice
            if mode == "max":
                # Reduce H first (elementwise VPU), then W (small XLU reduce).
                v = jnp.max(win, axis=0)                 # (dw, Ct)
                v = jnp.max(v, axis=0, keepdims=True)    # (1, Ct)
                if nv < area:
                    # Window overlaps the zero padding: F.pad(value=0)+MaxPool.
                    v = jnp.maximum(v, jnp.zeros_like(v))
            else:  # "avg": count_include_pad semantics (divide by full area)
                wf = win.astype(jnp.float32)
                v = jnp.sum(wf, axis=0)                  # (dw, Ct)  f32 accum
                v = jnp.sum(v, axis=0, keepdims=True)    # (1, Ct)
                v = v * jnp.float32(1.0 / float(area))
            o_ref[0, b:b + 1, :] = v.astype(o_ref.dtype)

    return kernel


def _choose_c_tile(H, W, Cp, itemsize, budget_bytes=4 << 20):
    """Largest channel tile (multiple of 128, divisor of Cp) whose input block
    stays under ~4 MiB, so double-buffering fits every generation's VMEM."""
    n128 = Cp // 128
    best = 128
    for d in range(1, n128 + 1):
        if n128 % d == 0 and H * W * (128 * d) * itemsize <= budget_bytes:
            best = 128 * d
    return best


def pyramid_pooling(x, levels, mode="max"):
    """Pallas implementation of PyramidPooling.spatial_pyramid_pool.

    Args:
        x: (N, C, H, W) array (NCHW, as in PyTorch).
        levels: tuple of pyramid levels.
        mode: "max" or "avg".

    Returns:
        (N, sum(C * L * L for L in levels)) array, in PyTorch's concat order.
    """
    if mode not in ("max", "avg"):
        raise ValueError('Unknown pooling type: %s, please use "max" or "avg".' % mode)
    N, C, H, W = x.shape

    # Channels-on-lanes layout, C padded to a multiple of 128.
    Cp = ((C + 127) // 128) * 128
    xt = jnp.transpose(x, (0, 2, 3, 1))  # (N, H, W, C)
    if Cp != C:
        xt = jnp.pad(xt, ((0, 0), (0, 0), (0, 0), (0, Cp - C)))

    _, total_bins = _window_table(levels, H, W)
    c_tile = _choose_c_tile(H, W, Cp, xt.dtype.itemsize)
    kernel = _make_spp_kernel(levels, mode, H, W)

    y = pl.pallas_call(
        kernel,
        out_shape=jax.ShapeDtypeStruct((N, total_bins, Cp), x.dtype),
        grid=(N, Cp // c_tile),
        in_specs=[pl.BlockSpec((1, H, W, c_tile), lambda n, c: (n, 0, 0, c))],
        out_specs=pl.BlockSpec((1, total_bins, c_tile), lambda n, c: (n, 0, c)),
        compiler_params=pltpu.CompilerParams(
            dimension_semantics=("parallel", "parallel"),
        ),
    )(xt)

    # Restore torch's flattening order: per level, (N, C, L, L).view(N, -1).
    outs = []
    off = 0
    for L in levels:
        nb = L * L
        y_l = y[:, off:off + nb, :C]                      # (N, L*L, C)
        outs.append(jnp.transpose(y_l, (0, 2, 1)).reshape(N, C * nb))
        off += nb
    return jnp.concatenate(outs, axis=1)


def pyramid_pooling_ref(x, levels, mode="max"):
    """Pure-JAX reference (mirrors the PyTorch semantics) for validation."""
    N, C, H, W = x.shape
    outs = []
    for L in levels:
        hk = int(math.ceil(H / L))
        wk = int(math.ceil(W / L))
        h_pad = hk * L - H
        w_pad = wk * L - W
        h1, h2 = h_pad // 2, h_pad - h_pad // 2
        w1, w2 = w_pad // 2, w_pad - w_pad // 2
        xp = jnp.pad(x, ((0, 0), (0, 0), (h1, h2), (w1, w2)))
        xr = xp.reshape(N, C, L, hk, L, wk)
        if mode == "max":
            v = xr.max(axis=(3, 5))
        else:
            v = xr.mean(axis=(3, 5))
        outs.append(v.reshape(N, -1))
    return jnp.concatenate(outs, axis=1)


if __name__ == "__main__":
    key = jax.random.PRNGKey(0)
    N, C, H, W = 2, 4, 16, 16
    levels = (1, 2, 3)  # level 3 exercises the centered-zero-padding path

    x = jax.random.normal(key, (N, C, H, W), dtype=jnp.float32)

    out_max = jax.block_until_ready(pyramid_pooling(x, levels, "max"))
    ref_max = pyramid_pooling_ref(x, levels, "max")
    assert out_max.shape == (N, sum(C * L * L for L in levels)), out_max.shape
    np.testing.assert_allclose(np.asarray(out_max), np.asarray(ref_max),
                               rtol=1e-6, atol=1e-6)

    out_avg = jax.block_until_ready(pyramid_pooling(x, levels, "avg"))
    ref_avg = pyramid_pooling_ref(x, levels, "avg")
    np.testing.assert_allclose(np.asarray(out_avg), np.asarray(ref_avg),
                               rtol=1e-5, atol=1e-5)

    print("KERNEL_OK")
</pallas_src>

<mosaic_0001>
module attributes {stable_mosaic.version = 11 : i64} {
  func.func @kernel(%arg0: i32, %arg1: i32, %arg2: memref<1x16x16x128xf32, #tpu.memory_space<vmem>>, %arg3: memref<1x14x128xf32, #tpu.memory_space<vmem>>) attributes {dimension_semantics = [#tpu.dimension_semantics<parallel>, #tpu.dimension_semantics<parallel>], iteration_bounds = array<i64: 2, 1>, scalar_prefetch = 0 : i64, scratch_operands = 0 : i64, tpu.core_type = #tpu.core_type<tc>, window_params = [{transform_indices = @transform_0, window_bounds = array<i64: 1, 16, 16, 128>}, {transform_indices = @transform_1, window_bounds = array<i64: 1, 14, 128>}]} {
    %c0 = arith.constant 0 : index
    %c0_0 = arith.constant 0 : index
    %c0_1 = arith.constant 0 : index
    %c0_2 = arith.constant 0 : index
    %0 = vector.load %arg2[%c0, %c0_0, %c0_1, %c0_2] : memref<1x16x16x128xf32, #tpu.memory_space<vmem>>, vector<1x16x16x128xf32>
    %1 = vector.shape_cast %0 : vector<1x16x16x128xf32> to vector<16x16x128xf32>
    %cst = arith.constant dense<0xFF800000> : vector<16x128xf32>
    %2 = vector.multi_reduction <maximumf>, %1, %cst [0] : vector<16x16x128xf32> to vector<16x128xf32>
    %cst_3 = arith.constant dense<0xFF800000> : vector<128xf32>
    %3 = vector.multi_reduction <maximumf>, %2, %cst_3 [0] : vector<16x128xf32> to vector<128xf32>
    %4 = vector.shape_cast %3 : vector<128xf32> to vector<1x128xf32>
    %c0_4 = arith.constant 0 : index
    %c0_5 = arith.constant 0 : index
    %c0_6 = arith.constant 0 : index
    %5 = vector.load %arg3[%c0_4, %c0_5, %c0_6] : memref<1x14x128xf32, #tpu.memory_space<vmem>>, vector<1x1x128xf32>
    %6 = vector.shape_cast %5 : vector<1x1x128xf32> to vector<1x128xf32>
    %7 = vector.shape_cast %4 : vector<1x128xf32> to vector<1x1x128xf32>
    tpu.vector_store %arg3[%c0_4, %c0_5, %c0_6], %7 {strides = array<i32>} : memref<1x14x128xf32, #tpu.memory_space<vmem>>, vector<1x1x128xf32>,
    %c0_7 = arith.constant 0 : index
    %c0_8 = arith.constant 0 : index
    %c0_9 = arith.constant 0 : index
    %c0_10 = arith.constant 0 : index
    %8 = vector.load %arg2[%c0_7, %c0_8, %c0_9, %c0_10] : memref<1x16x16x128xf32, #tpu.memory_space<vmem>>, vector<1x8x8x128xf32>
    %9 = vector.shape_cast %8 : vector<1x8x8x128xf32> to vector<8x8x128xf32>
    %cst_11 = arith.constant dense<0xFF800000> : vector<8x128xf32>
    %10 = vector.multi_reduction <maximumf>, %9, %cst_11 [0] : vector<8x8x128xf32> to vector<8x128xf32>
    %cst_12 = arith.constant dense<0xFF800000> : vector<128xf32>
    %11 = vector.multi_reduction <maximumf>, %10, %cst_12 [0] : vector<8x128xf32> to vector<128xf32>
    %12 = vector.shape_cast %11 : vector<128xf32> to vector<1x128xf32>
    %c0_13 = arith.constant 0 : index
    %c1 = arith.constant 1 : index
    %c0_14 = arith.constant 0 : index
    %13 = vector.load %arg3[%c0_13, %c1, %c0_14] : memref<1x14x128xf32, #tpu.memory_space<vmem>>, vector<1x1x128xf32>
    %14 = vector.shape_cast %13 : vector<1x1x128xf32> to vector<1x128xf32>
    %15 = vector.shape_cast %12 : vector<1x128xf32> to vector<1x1x128xf32>
    tpu.vector_store %arg3[%c0_13, %c1, %c0_14], %15 {strides = array<i32>} : memref<1x14x128xf32, #tpu.memory_space<vmem>>, vector<1x1x128xf32>,
    %c0_15 = arith.constant 0 : index
    %c0_16 = arith.constant 0 : index
    %c8 = arith.constant 8 : index
    %c0_17 = arith.constant 0 : index
    %16 = vector.load %arg2[%c0_15, %c0_16, %c8, %c0_17] : memref<1x16x16x128xf32, #tpu.memory_space<vmem>>, vector<1x8x8x128xf32>
    %17 = vector.shape_cast %16 : vector<1x8x8x128xf32> to vector<8x8x128xf32>
    %cst_18 = arith.constant dense<0xFF800000> : vector<8x128xf32>
    %18 = vector.multi_reduction <maximumf>, %17, %cst_18 [0] : vector<8x8x128xf32> to vector<8x128xf32>
    %cst_19 = arith.constant dense<0xFF800000> : vector<128xf32>
    %19 = vector.multi_reduction <maximumf>, %18, %cst_19 [0] : vector<8x128xf32> to vector<128xf32>
    %20 = vector.shape_cast %19 : vector<128xf32> to vector<1x128xf32>
    %c0_20 = arith.constant 0 : index
    %c2 = arith.constant 2 : index
    %c0_21 = arith.constant 0 : index
    %21 = vector.load %arg3[%c0_20, %c2, %c0_21] : memref<1x14x128xf32, #tpu.memory_space<vmem>>, vector<1x1x128xf32>
    %22 = vector.shape_cast %21 : vector<1x1x128xf32> to vector<1x128xf32>
    %23 = vector.shape_cast %20 : vector<1x128xf32> to vector<1x1x128xf32>
    tpu.vector_store %arg3[%c0_20, %c2, %c0_21], %23 {strides = array<i32>} : memref<1x14x128xf32, #tpu.memory_space<vmem>>, vector<1x1x128xf32>,
    %c0_22 = arith.constant 0 : index
    %c8_23 = arith.constant 8 : index
    %c0_24 = arith.constant 0 : index
    %c0_25 = arith.constant 0 : index
    %24 = vector.load %arg2[%c0_22, %c8_23, %c0_24, %c0_25] : memref<1x16x16x128xf32, #tpu.memory_space<vmem>>, vector<1x8x8x128xf32>
    %25 = vector.shape_cast %24 : vector<1x8x8x128xf32> to vector<8x8x128xf32>
    %cst_26 = arith.constant dense<0xFF800000> : vector<8x128xf32>
    %26 = vector.multi_reduction <maximumf>, %25, %cst_26 [0] : vector<8x8x128xf32> to vector<8x128xf32>
    %cst_27 = arith.constant dense<0xFF800000> : vector<128xf32>
    %27 = vector.multi_reduction <maximumf>, %26, %cst_27 [0] : vector<8x128xf32> to vector<128xf32>
    %28 = vector.shape_cast %27 : vector<128xf32> to vector<1x128xf32>
    %c0_28 = arith.constant 0 : index
    %c3 = arith.constant 3 : index
    %c0_29 = arith.constant 0 : index
    %29 = vector.load %arg3[%c0_28, %c3, %c0_29] : memref<1x14x128xf32, #tpu.memory_space<vmem>>, vector<1x1x128xf32>
    %30 = vector.shape_cast %29 : vector<1x1x128xf32> to vector<1x128xf32>
    %31 = vector.shape_cast %28 : vector<1x128xf32> to vector<1x1x128xf32>
    tpu.vector_store %arg3[%c0_28, %c3, %c0_29], %31 {strides = array<i32>} : memref<1x14x128xf32, #tpu.memory_space<vmem>>, vector<1x1x128xf32>,
    %c0_30 = arith.constant 0 : index
    %c8_31 = arith.constant 8 : index
    %c8_32 = arith.constant 8 : index
    %c0_33 = arith.constant 0 : index
    %32 = vector.load %arg2[%c0_30, %c8_31, %c8_32, %c0_33] : memref<1x16x16x128xf32, #tpu.memory_space<vmem>>, vector<1x8x8x128xf32>
    %33 = vector.shape_cast %32 : vector<1x8x8x128xf32> to vector<8x8x128xf32>
    %cst_34 = arith.constant dense<0xFF800000> : vector<8x128xf32>
    %34 = vector.multi_reduction <maximumf>, %33, %cst_34 [0] : vector<8x8x128xf32> to vector<8x128xf32>
    %cst_35 = arith.constant dense<0xFF800000> : vector<128xf32>
    %35 = vector.multi_reduction <maximumf>, %34, %cst_35 [0] : vector<8x128xf32> to vector<128xf32>
    %36 = vector.shape_cast %35 : vector<128xf32> to vector<1x128xf32>
    %c0_36 = arith.constant 0 : index
    %c4 = arith.constant 4 : index
    %c0_37 = arith.constant 0 : index
    %37 = vector.load %arg3[%c0_36, %c4, %c0_37] : memref<1x14x128xf32, #tpu.memory_space<vmem>>, vector<1x1x128xf32>
    %38 = vector.shape_cast %37 : vector<1x1x128xf32> to vector<1x128xf32>
    %39 = vector.shape_cast %36 : vector<1x128xf32> to vector<1x1x128xf32>
    tpu.vector_store %arg3[%c0_36, %c4, %c0_37], %39 {strides = array<i32>} : memref<1x14x128xf32, #tpu.memory_space<vmem>>, vector<1x1x128xf32>,
    %c0_38 = arith.constant 0 : index
    %c0_39 = arith.constant 0 : index
    %c0_40 = arith.constant 0 : index
    %c0_41 = arith.constant 0 : index
    %40 = vector.load %arg2[%c0_38, %c0_39, %c0_40, %c0_41] : memref<1x16x16x128xf32, #tpu.memory_space<vmem>>, vector<1x5x5x128xf32>
    %41 = vector.shape_cast %40 : vector<1x5x5x128xf32> to vector<5x5x128xf32>
    %cst_42 = arith.constant dense<0xFF800000> : vector<5x128xf32>
    %42 = vector.multi_reduction <maximumf>, %41, %cst_42 [0] : vector<5x5x128xf32> to vector<5x128xf32>
    %cst_43 = arith.constant dense<0xFF800000> : vector<128xf32>
    %43 = vector.multi_reduction <maximumf>, %42, %cst_43 [0] : vector<5x128xf32> to vector<128xf32>
    %44 = vector.shape_cast %43 : vector<128xf32> to vector<1x128xf32>
    %cst_44 = arith.constant 0.000000e+00 : f32
    %45 = vector.broadcast %cst_44 : f32 to vector<1x128xf32>
    %46 = arith.maximumf %44, %45 : vector<1x128xf32>
    %c0_45 = arith.constant 0 : index
    %c5 = arith.constant 5 : index
    %c0_46 = arith.constant 0 : index
    %47 = vector.load %arg3[%c0_45, %c5, %c0_46] : memref<1x14x128xf32, #tpu.memory_space<vmem>>, vector<1x1x128xf32>
    %48 = vector.shape_cast %47 : vector<1x1x128xf32> to vector<1x128xf32>
    %49 = vector.shape_cast %46 : vector<1x128xf32> to vector<1x1x128xf32>
    tpu.vector_store %arg3[%c0_45, %c5, %c0_46], %49 {strides = array<i32>} : memref<1x14x128xf32, #tpu.memory_space<vmem>>, vector<1x1x128xf32>,
    %c0_47 = arith.constant 0 : index
    %c0_48 = arith.constant 0 : index
    %c5_49 = arith.constant 5 : index
    %c0_50 = arith.constant 0 : index
    %50 = vector.load %arg2[%c0_47, %c0_48, %c5_49, %c0_50] : memref<1x16x16x128xf32, #tpu.memory_space<vmem>>, vector<1x5x6x128xf32>
    %51 = vector.shape_cast %50 : vector<1x5x6x128xf32> to vector<5x6x128xf32>
    %cst_51 = arith.constant dense<0xFF800000> : vector<6x128xf32>
    %52 = vector.multi_reduction <maximumf>, %51, %cst_51 [0] : vector<5x6x128xf32> to vector<6x128xf32>
    %cst_52 = arith.constant dense<0xFF800000> : vector<128xf32>
    %53 = vector.multi_reduction <maximumf>, %52, %cst_52 [0] : vector<6x128xf32> to vector<128xf32>
    %54 = vector.shape_cast %53 : vector<128xf32> to vector<1x128xf32>
    %cst_53 = arith.constant 0.000000e+00 : f32
    %55 = vector.broadcast %cst_53 : f32 to vector<1x128xf32>
    %56 = arith.maximumf %54, %55 : vector<1x128xf32>
    %c0_54 = arith.constant 0 : index
    %c6 = arith.constant 6 : index
    %c0_55 = arith.constant 0 : index
    %57 = vector.load %arg3[%c0_54, %c6, %c0_55] : memref<1x14x128xf32, #tpu.memory_space<vmem>>, vector<1x1x128xf32>
    %58 = vector.shape_cast %57 : vector<1x1x128xf32> to vector<1x128xf32>
    %59 = vector.shape_cast %56 : vector<1x128xf32> to vector<1x1x128xf32>
    tpu.vector_store %arg3[%c0_54, %c6, %c0_55], %59 {strides = array<i32>} : memref<1x14x128xf32, #tpu.memory_space<vmem>>, vector<1x1x128xf32>,
    %c0_56 = arith.constant 0 : index
    %c0_57 = arith.constant 0 : index
    %c11 = arith.constant 11 : index
    %c0_58 = arith.constant 0 : index
    %60 = vector.load %arg2[%c0_56, %c0_57, %c11, %c0_58] : memref<1x16x16x128xf32, #tpu.memory_space<vmem>>, vector<1x5x5x128xf32>
    %61 = vector.shape_cast %60 : vector<1x5x5x128xf32> to vector<5x5x128xf32>
    %cst_59 = arith.constant dense<0xFF800000> : vector<5x128xf32>
    %62 = vector.multi_reduction <maximumf>, %61, %cst_59 [0] : vector<5x5x128xf32> to vector<5x128xf32>
    %cst_60 = arith.constant dense<0xFF800000> : vector<128xf32>
    %63 = vector.multi_reduction <maximumf>, %62, %cst_60 [0] : vector<5x128xf32> to vector<128xf32>
    %64 = vector.shape_cast %63 : vector<128xf32> to vector<1x128xf32>
    %cst_61 = arith.constant 0.000000e+00 : f32
    %65 = vector.broadcast %cst_61 : f32 to vector<1x128xf32>
    %66 = arith.maximumf %64, %65 : vector<1x128xf32>
    %c0_62 = arith.constant 0 : index
    %c7 = arith.constant 7 : index
    %c0_63 = arith.constant 0 : index
    %67 = vector.load %arg3[%c0_62, %c7, %c0_63] : memref<1x14x128xf32, #tpu.memory_space<vmem>>, vector<1x1x128xf32>
    %68 = vector.shape_cast %67 : vector<1x1x128xf32> to vector<1x128xf32>
    %69 = vector.shape_cast %66 : vector<1x128xf32> to vector<1x1x128xf32>
    tpu.vector_store %arg3[%c0_62, %c7, %c0_63], %69 {strides = array<i32>} : memref<1x14x128xf32, #tpu.memory_space<vmem>>, vector<1x1x128xf32>,
    %c0_64 = arith.constant 0 : index
    %c5_65 = arith.constant 5 : index
    %c0_66 = arith.constant 0 : index
    %c0_67 = arith.constant 0 : index
    %70 = vector.load %arg2[%c0_64, %c5_65, %c0_66, %c0_67] : memref<1x16x16x128xf32, #tpu.memory_space<vmem>>, vector<1x6x5x128xf32>
    %71 = vector.shape_cast %70 : vector<1x6x5x128xf32> to vector<6x5x128xf32>
    %cst_68 = arith.constant dense<0xFF800000> : vector<5x128xf32>
    %72 = vector.multi_reduction <maximumf>, %71, %cst_68 [0] : vector<6x5x128xf32> to vector<5x128xf32>
    %cst_69 = arith.constant dense<0xFF800000> : vector<128xf32>
    %73 = vector.multi_reduction <maximumf>, %72, %cst_69 [0] : vector<5x128xf32> to vector<128xf32>
    %74 = vector.shape_cast %73 : vector<128xf32> to vector<1x128xf32>
    %cst_70 = arith.constant 0.000000e+00 : f32
    %75 = vector.broadcast %cst_70 : f32 to vector<1x128xf32>
    %76 = arith.maximumf %74, %75 : vector<1x128xf32>
    %c0_71 = arith.constant 0 : index
    %c8_72 = arith.constant 8 : index
    %c0_73 = arith.constant 0 : index
    %77 = vector.load %arg3[%c0_71, %c8_72, %c0_73] : memref<1x14x128xf32, #tpu.memory_space<vmem>>, vector<1x1x128xf32>
    %78 = vector.shape_cast %77 : vector<1x1x128xf32> to vector<1x128xf32>
    %79 = vector.shape_cast %76 : vector<1x128xf32> to vector<1x1x128xf32>
    tpu.vector_store %arg3[%c0_71, %c8_72, %c0_73], %79 {strides = array<i32>} : memref<1x14x128xf32, #tpu.memory_space<vmem>>, vector<1x1x128xf32>,
    %c0_74 = arith.constant 0 : index
    %c5_75 = arith.constant 5 : index
    %c5_76 = arith.constant 5 : index
    %c0_77 = arith.constant 0 : index
    %80 = vector.load %arg2[%c0_74, %c5_75, %c5_76, %c0_77] : memref<1x16x16x128xf32, #tpu.memory_space<vmem>>, vector<1x6x6x128xf32>
    %81 = vector.shape_cast %80 : vector<1x6x6x128xf32> to vector<6x6x128xf32>
    %cst_78 = arith.constant dense<0xFF800000> : vector<6x128xf32>
    %82 = vector.multi_reduction <maximumf>, %81, %cst_78 [0] : vector<6x6x128xf32> to vector<6x128xf32>
    %cst_79 = arith.constant dense<0xFF800000> : vector<128xf32>
    %83 = vector.multi_reduction <maximumf>, %82, %cst_79 [0] : vector<6x128xf32> to vector<128xf32>
    %84 = vector.shape_cast %83 : vector<128xf32> to vector<1x128xf32>
    %c0_80 = arith.constant 0 : index
    %c9 = arith.constant 9 : index
    %c0_81 = arith.constant 0 : index
    %85 = vector.load %arg3[%c0_80, %c9, %c0_81] : memref<1x14x128xf32, #tpu.memory_space<vmem>>, vector<1x1x128xf32>
    %86 = vector.shape_cast %85 : vector<1x1x128xf32> to vector<1x128xf32>
    %87 = vector.shape_cast %84 : vector<1x128xf32> to vector<1x1x128xf32>
    tpu.vector_store %arg3[%c0_80, %c9, %c0_81], %87 {strides = array<i32>} : memref<1x14x128xf32, #tpu.memory_space<vmem>>, vector<1x1x128xf32>,
    %c0_82 = arith.constant 0 : index
    %c5_83 = arith.constant 5 : index
    %c11_84 = arith.constant 11 : index
    %c0_85 = arith.constant 0 : index
    %88 = vector.load %arg2[%c0_82, %c5_83, %c11_84, %c0_85] : memref<1x16x16x128xf32, #tpu.memory_space<vmem>>, vector<1x6x5x128xf32>
    %89 = vector.shape_cast %88 : vector<1x6x5x128xf32> to vector<6x5x128xf32>
    %cst_86 = arith.constant dense<0xFF800000> : vector<5x128xf32>
    %90 = vector.multi_reduction <maximumf>, %89, %cst_86 [0] : vector<6x5x128xf32> to vector<5x128xf32>
    %cst_87 = arith.constant dense<0xFF800000> : vector<128xf32>
    %91 = vector.multi_reduction <maximumf>, %90, %cst_87 [0] : vector<5x128xf32> to vector<128xf32>
    %92 = vector.shape_cast %91 : vector<128xf32> to vector<1x128xf32>
    %cst_88 = arith.constant 0.000000e+00 : f32
    %93 = vector.broadcast %cst_88 : f32 to vector<1x128xf32>
    %94 = arith.maximumf %92, %93 : vector<1x128xf32>
    %c0_89 = arith.constant 0 : index
    %c10 = arith.constant 10 : index
    %c0_90 = arith.constant 0 : index
    %95 = vector.load %arg3[%c0_89, %c10, %c0_90] : memref<1x14x128xf32, #tpu.memory_space<vmem>>, vector<1x1x128xf32>
    %96 = vector.shape_cast %95 : vector<1x1x128xf32> to vector<1x128xf32>
    %97 = vector.shape_cast %94 : vector<1x128xf32> to vector<1x1x128xf32>
    tpu.vector_store %arg3[%c0_89, %c10, %c0_90], %97 {strides = array<i32>} : memref<1x14x128xf32, #tpu.memory_space<vmem>>, vector<1x1x128xf32>,
    %c0_91 = arith.constant 0 : index
    %c11_92 = arith.constant 11 : index
    %c0_93 = arith.constant 0 : index
    %c0_94 = arith.constant 0 : index
    %98 = vector.load %arg2[%c0_91, %c11_92, %c0_93, %c0_94] : memref<1x16x16x128xf32, #tpu.memory_space<vmem>>, vector<1x5x5x128xf32>
    %99 = vector.shape_cast %98 : vector<1x5x5x128xf32> to vector<5x5x128xf32>
    %cst_95 = arith.constant dense<0xFF800000> : vector<5x128xf32>
    %100 = vector.multi_reduction <maximumf>, %99, %cst_95 [0] : vector<5x5x128xf32> to vector<5x128xf32>
    %cst_96 = arith.constant dense<0xFF800000> : vector<128xf32>
    %101 = vector.multi_reduction <maximumf>, %100, %cst_96 [0] : vector<5x128xf32> to vector<128xf32>
    %102 = vector.shape_cast %101 : vector<128xf32> to vector<1x128xf32>
    %cst_97 = arith.constant 0.000000e+00 : f32
    %103 = vector.broadcast %cst_97 : f32 to vector<1x128xf32>
    %104 = arith.maximumf %102, %103 : vector<1x128xf32>
    %c0_98 = arith.constant 0 : index
    %c11_99 = arith.constant 11 : index
    %c0_100 = arith.constant 0 : index
    %105 = vector.load %arg3[%c0_98, %c11_99, %c0_100] : memref<1x14x128xf32, #tpu.memory_space<vmem>>, vector<1x1x128xf32>
    %106 = vector.shape_cast %105 : vector<1x1x128xf32> to vector<1x128xf32>
    %107 = vector.shape_cast %104 : vector<1x128xf32> to vector<1x1x128xf32>
    tpu.vector_store %arg3[%c0_98, %c11_99, %c0_100], %107 {strides = array<i32>} : memref<1x14x128xf32, #tpu.memory_space<vmem>>, vector<1x1x128xf32>,
    %c0_101 = arith.constant 0 : index
    %c11_102 = arith.constant 11 : index
    %c5_103 = arith.constant 5 : index
    %c0_104 = arith.constant 0 : index
    %108 = vector.load %arg2[%c0_101, %c11_102, %c5_103, %c0_104] : memref<1x16x16x128xf32, #tpu.memory_space<vmem>>, vector<1x5x6x128xf32>
    %109 = vector.shape_cast %108 : vector<1x5x6x128xf32> to vector<5x6x128xf32>
    %cst_105 = arith.constant dense<0xFF800000> : vector<6x128xf32>
    %110 = vector.multi_reduction <maximumf>, %109, %cst_105 [0] : vector<5x6x128xf32> to vector<6x128xf32>
    %cst_106 = arith.constant dense<0xFF800000> : vector<128xf32>
    %111 = vector.multi_reduction <maximumf>, %110, %cst_106 [0] : vector<6x128xf32> to vector<128xf32>
    %112 = vector.shape_cast %111 : vector<128xf32> to vector<1x128xf32>
    %cst_107 = arith.constant 0.000000e+00 : f32
    %113 = vector.broadcast %cst_107 : f32 to vector<1x128xf32>
    %114 = arith.maximumf %112, %113 : vector<1x128xf32>
    %c0_108 = arith.constant 0 : index
    %c12 = arith.constant 12 : index
    %c0_109 = arith.constant 0 : index
    %115 = vector.load %arg3[%c0_108, %c12, %c0_109] : memref<1x14x128xf32, #tpu.memory_space<vmem>>, vector<1x1x128xf32>
    %116 = vector.shape_cast %115 : vector<1x1x128xf32> to vector<1x128xf32>
    %117 = vector.shape_cast %114 : vector<1x128xf32> to vector<1x1x128xf32>
    tpu.vector_store %arg3[%c0_108, %c12, %c0_109], %117 {strides = array<i32>} : memref<1x14x128xf32, #tpu.memory_space<vmem>>, vector<1x1x128xf32>,
    %c0_110 = arith.constant 0 : index
    %c11_111 = arith.constant 11 : index
    %c11_112 = arith.constant 11 : index
    %c0_113 = arith.constant 0 : index
    %118 = vector.load %arg2[%c0_110, %c11_111, %c11_112, %c0_113] : memref<1x16x16x128xf32, #tpu.memory_space<vmem>>, vector<1x5x5x128xf32>
    %119 = vector.shape_cast %118 : vector<1x5x5x128xf32> to vector<5x5x128xf32>
    %cst_114 = arith.constant dense<0xFF800000> : vector<5x128xf32>
    %120 = vector.multi_reduction <maximumf>, %119, %cst_114 [0] : vector<5x5x128xf32> to vector<5x128xf32>
    %cst_115 = arith.constant dense<0xFF800000> : vector<128xf32>
    %121 = vector.multi_reduction <maximumf>, %120, %cst_115 [0] : vector<5x128xf32> to vector<128xf32>
    %122 = vector.shape_cast %121 : vector<128xf32> to vector<1x128xf32>
    %cst_116 = arith.constant 0.000000e+00 : f32
    %123 = vector.broadcast %cst_116 : f32 to vector<1x128xf32>
    %124 = arith.maximumf %122, %123 : vector<1x128xf32>
    %c0_117 = arith.constant 0 : index
    %c13 = arith.constant 13 : index
    %c0_118 = arith.constant 0 : index
    %125 = vector.load %arg3[%c0_117, %c13, %c0_118] : memref<1x14x128xf32, #tpu.memory_space<vmem>>, vector<1x1x128xf32>
    %126 = vector.shape_cast %125 : vector<1x1x128xf32> to vector<1x128xf32>
    %127 = vector.shape_cast %124 : vector<1x128xf32> to vector<1x1x128xf32>
    tpu.vector_store %arg3[%c0_117, %c13, %c0_118], %127 {strides = array<i32>} : memref<1x14x128xf32, #tpu.memory_space<vmem>>, vector<1x1x128xf32>,
    return
  }
  func.func @transform_0(%arg0: i32, %arg1: i32) -> (i32, i32, i32, i32) {
    %c0_i32 = arith.constant 0 : i32
    %c0_i32_0 = arith.constant 0 : i32
    %c0_i32_1 = arith.constant 0 : i32
    return %arg0, %c0_i32, %c0_i32_0, %arg1 : i32, i32, i32, i32
  }
  func.func @transform_1(%arg0: i32, %arg1: i32) -> (i32, i32, i32) {
    %c0_i32 = arith.constant 0 : i32
    %c0_i32_0 = arith.constant 0 : i32
    return %arg0, %c0_i32, %arg1 : i32, i32, i32
  }
}

</mosaic_0001>

<bundles_post_ra>
// kernel: tpu_custom_call.1
= control target key start
LH: loop header
LB: loop body
LE: loop exit
PB: predicated region body
PF: predicated region fallthrough
CT: control target
= control target key end

     0   :  { %6 = vsyncpa [#allocation3], 0  ;;  %s1145_s0 = inlined_call_operand.hbm [shape: f32[2,16,16,128], index: 0, kind: input, shape index: {}]   ;;  %s1146_s1 = inlined_call_operand.vmem [shape: f32[2,14,128], index: 1, kind: output, shape index: {}]  }
   0x1   :  { %8 = vsyncpa [#allocation3 + $0x1], 0  ;;  %s845_s6 = smov 0   ;;  %s847_s7 = smov 0  }
   0x2   :  { %s849_s8 = smov 0   ;;  %s851_s9 = smov 0  }
   0x3   :  { %s853_s10 = smov 0   ;;  %s855_s11 = smov 0  }
   0x4 LB: > { %s629_s12 = sadd.s32 4294967295, %s830_s11   ;;  %s26_s13 = sadd.s32 1, %s826_s10  ;;  %s830_s11 = sphi %s855_s11, %s14_s11   ;;  %s826_s10 = sphi %s853_s10, %s1154_s10   ;;  %s822_s9 = sphi %s851_s9, %s1153_s9   ;;  %s818_s8 = sphi %s849_s8, %s1152_s8   ;;  %s814_s7 = sphi %s847_s7, %s1151_s7   ;;  %s810_s6 = sphi %s845_s6, %s1150_s6  }
   0x5   : > { %p28_p0 = scmp.ge.s32.totalorder %s26_s13, 2  ;;  %s35_s14 = sadd.s32 1, %s818_s8 }
   0x6   : > { %p42_p1 = scmp.ne.s32.totalorder %s818_s8, %s814_s7  ;;  %p43_p2 = scmp.eq.s32.totalorder %s830_s11, 0 }
   0x7   : > { %s1156_s13 = smov (%p28_p0, %s26_s13), 0  ;;  %p48_p4 = scmp.ne.s32.totalorder %s814_s7, %s810_s6 }
   0x8   : > { %p881_p3 = por %p43_p2, %p42_p1  ;;  %s30_s16 = ssub.s32 %s826_s10, %s1156_s13 }
   0x9   : > { %p49_p5 = scmp.eq.s32.totalorder %s629_s12, 0  ;;  %p33_p6 = scmp.eq.s32.totalorder %s30_s16, 0 }
   0xa   : > { %p699_p8 = scmp.lt.s32.totalorder %s830_s11, 2  ;;  %s100_s19 = sand.u32 1, %s818_s8  }
   0xb   : > { %p888_p7 = por %p49_p5, %p48_p4  ;;  %s691_s20 = sshll.u32 %s826_s10, 12 }
   0xc   : > { %s894_s18 = scalar_select %p33_p6, %s818_s8, %s35_s14  }
   0xd   : > { %s633_s21 = sshll.u32 %s100_s19, 8  ;;  %s901_s24 = scalar_lea.hbm %s1145_s0, %s691_s20 }
   0xe   : > { %s104_s25 = scalar_lea.vmem [#allocation2], %s633_s21  ;;  %p905_p9 = pnand %p699_p8, %p881_p3 }
   0xf   : > { %s112_s26 = sshll.u32 %s104_s25, 4  ;;  %s911_s28 = scalar_lea.sflag [#allocation3], %s100_s19  ;;  %s909_s26 = int_to_ptr.vmem [resolvable:$true] %s112_s26 }
  0x10   : > { %s750_s29 = scalar_lea.hbm %s901_s24, 4096  ;;  %p752_p11 = pneg %p905_p9 }
  0x11   : > { %p751_p10 = scmp.ne.s32.totalorder %s901_s24, %s750_s29  ;;  %s755_s3 = scalar_lea.hbm %s1145_s0, 8192 }
  0x12   : > { %p756_p0 = scmp.lt.u32.totalorder %s901_s24, %s1145_s0  ;;  %p757_p1 = scmp.lt.u32.totalorder %s755_s3, %s750_s29 }
  0x13   : > { %p753_p12 = pnand %p752_p11, %p751_p10  ;;  %p759_p3 = scmp.lt.u32.totalorder %s750_s29, %s901_s24 }
  0x14   : > { %p758_p2 = por %p757_p1, %p756_p0 }
  0x15   : > { %p754_p13 = pneg %p753_p12 }
  0x16   : > { %p760_p4 = por %p759_p3, %p758_p2 }
  0x18   : > { %p761_p5 = pnand %p760_p4, %p754_p13 }
  0x1a   : > { %764 = shalt.err (!%p761_p5)
}
  0x1b   : > { %s765_s6 = scalar_lea.vmem %s909_s26, 4096  ;;  %s832_s12 = smov [#allocation2]  }
  0x1c   : > { %p766_p6 = scmp.ne.s32.totalorder %s909_s26, %s765_s6  ;;  %s770_s14 = sshll.u32 %s832_s12, 4  ;;  %s771_s14 = int_to_ptr.vmem [resolvable:$false] %s770_s14 }
  0x1d   : > { %s772_s15 = scalar_lea.vmem %s771_s14, 8192  ;;  %p773_p12 = scmp.lt.s32.totalorder %s909_s26, %s771_s14 }
  0x1e   : > { %p768_p8 = pnand %p766_p6, %p752_p11  ;;  %p774_p0 = scmp.lt.s32.totalorder %s772_s15, %s765_s6 }
  0x20   : > { %p769_p10 = pneg %p768_p8  ;;  %p775_p1 = por %p774_p0, %p773_p12 }
  0x22   : > { %p776_p2 = pnand %p775_p1, %p769_p10 }
  0x24   : > { %779 = shalt.err (!%p776_p2)
}
  0x25   : > { %s833_s16 = smov 128   ;;  %s834_s19 = smov 8  }
  0x26   : > { %698 = dma.hbm_to_vmem [thread:$0]  (!%p905_p9), %s901_s24, 4096, %s909_s26, %s911_s28, %s833_s16, %s833_s16, %s834_s19  }
  0x27   : > { %p636_p11 = scmp.ge.s32.totalorder %s830_s11, 1  ;;  %p120_p13 = scmp.lt.s32.totalorder %s830_s11, 3 }
  0x29   : > { %p121_p3 = pnand %p636_p11, %p120_p13 }
  0x2a   : > { %s126_s20 = sand.u32 (!%p121_p3), 1, %s814_s7  }
  0x2b   : > { %124 = sbr.rel (%p121_p3) target bundleno = 130 (0x82), region = 24  ;;  %s637_s21 = sshll.u32 (!%p121_p3), %s126_s20, 8 }
  0x2c   : > { %s127_s22 = scalar_lea.sflag (!%p121_p3), [#allocation3], %s126_s20  ;;  %s942_s23 = scalar_lea.vmem (!%p121_p3), [#allocation2], %s637_s21 }
  0x32   : > { %805 = dma.done.wait (%p888_p7), %s127_s22, 4096  }
  0x33   : > { %807 = vsyncadd (%p888_p7), %s127_s22, 4294963200  ;;  %v160_v0 = vld [vmem:[%s942_s23] sm:$0xff]  ;;  %v161_v1 = vld [vmem:[%s942_s23 + $0x8] sm:$0xff]  ;;  %vm324_vm0 = vcmask 1044480   ;;  %p152_p7 = scmp.lt.s32.totalorder %s822_s9, 1  ;;  %vm348_vm1 = vcmask 1045504  }
  0x34   : > { %v162_v2 = vld [vmem:[%s942_s23 + $0x10] sm:$0xff]  ;;  %v163_v3 = vld [vmem:[%s942_s23 + $0x18] sm:$0xff]  ;;  %v164_v4 = vld [vmem:[%s942_s23 + $0x20] sm:$0xff] }
  0x35   : > { %v165_v5 = vld [vmem:[%s942_s23 + $0x28] sm:$0xff]  ;;  %v166_v6 = vld [vmem:[%s942_s23 + $0x30] sm:$0xff]  ;;  %v167_v7 = vld [vmem:[%s942_s23 + $0x38] sm:$0xff]  ;;  %v192_v9 = vmax.f32 %v160_v0, %v164_v4  ;;  %s1158_s9 = smov (!%p152_p7, %s822_s9), 1 }
  0x36   : > { %v168_v8 = vld [vmem:[%s942_s23 + $0x40] sm:$0xff]  ;;  %v207_v10 = vmax.f32 %v161_v1, %v165_v5  ;;  %v169_v11 = vld [vmem:[%s942_s23 + $0x48] sm:$0xff]  ;;  %v170_v12 = vld [vmem:[%s942_s23 + $0x50] sm:$0xff]  ;;  %v193_v14 = vmax.f32 %v162_v2, %v166_v6  ;;  %v208_v15 = vmax.f32 %v163_v3, %v167_v7  ;;  %s692_s17 = sshll.u32 %s1158_s9, 4 }
  0x37   : > { %v171_v13 = vld [vmem:[%s942_s23 + $0x58] sm:$0xff]  ;;  %v238_v16 = vmax.f32 %v160_v0, %v168_v8  ;;  %v172_v17 = vld [vmem:[%s942_s23 + $0x60] sm:$0xff]  ;;  %v173_v18 = vld [vmem:[%s942_s23 + $0x68] sm:$0xff]  ;;  %v194_v20 = vmax.f32 %v192_v9, %v168_v8  ;;  %v239_v22 = vmax.f32 %v162_v2, %v170_v12  ;;  %v260_v23 = vmax.f32 %v161_v1, %v169_v11  ;;  %s1013_s25 = scalar_lea.vmem %s1146_s1, %s692_s17 }
  0x38   : > { %v174_v19 = vld [vmem:[%s942_s23 + $0x70] sm:$0xff]  ;;  %v209_v21 = vmax.f32 %v207_v10, %v169_v11  ;;  %v175_v24 = vld [vmem:[%s942_s23 + $0x78] sm:$0xff]  ;;  %v176_v25 = vld [vmem:[%s942_s23 + $0x80] sm:$0xff]  ;;  %v195_v27 = vmax.f32 %v193_v14, %v170_v12  ;;  %v210_v28 = vmax.f32 %v208_v15, %v171_v13  ;;  %v240_v29 = vmax.f32 %v164_v4, %v172_v17 }
  0x39   : > { %v966_v26 = vld [vmem:[%s942_s23 + $0x88] sm:$0xff]  ;;  %v241_v30 = vmax.f32 %v166_v6, %v174_v19  ;;  %v178_v31 = vld [vmem:[%s942_s23 + $0x90] sm:$0xff]  ;;  %v970_v32 = vld [vmem:[%s942_s23 + $0x98] sm:$0xff]  ;;  %v196_v33 = vmax.f32 %v194_v20, %v172_v17  ;;  %v242_v35 = vmax.f32 %v238_v16, %v239_v22  ;;  %v261_v36 = vmax.f32 %v163_v3, %v171_v13 }
  0x3a   : > { %v211_v34 = vmax.f32 %v209_v21, %v173_v18  ;;  %v180_v37 = vld [vmem:[%s942_s23 + $0xa0] sm:$0xff]  ;;  %v974_v38 = vld [vmem:[%s942_s23 + $0xa8] sm:$0xff]  ;;  %v197_v39 = vmax.f32 %v195_v27, %v174_v19  ;;  %v212_v40 = vmax.f32 %v210_v28, %v175_v24  ;;  %v262_v42 = vmax.f32 %v165_v5, %v173_v18  ;;  %v182_v43 = vld [vmem:[%s942_s23 + $0xb0] sm:$0xff] }
  0x3b   : > { %v243_v41 = vmax.f32 %v240_v29, %v241_v30  ;;  %v978_v44 = vld [vmem:[%s942_s23 + $0xb8] sm:$0xff]  ;;  %v184_v45 = vld [vmem:[%s942_s23 + $0xc0] sm:$0xff]  ;;  %v198_v46 = vmax.f32 %v196_v33, %v176_v25  ;;  %v263_v48 = vmax.f32 %v167_v7, %v175_v24  ;;  %v264_v49 = vmax.f32 %v260_v23, %v261_v36  ;;  %v185_v50 = vld [vmem:[%s942_s23 + $0xc8] sm:$0xff] }
  0x3c   : > { %v213_v47 = vmax.f32 %v211_v34, %v966_v26  ;;  %v186_v51 = vld [vmem:[%s942_s23 + $0xd0] sm:$0xff]  ;;  %v188_v52 = vld [vmem:[%s942_s23 + $0xe0] sm:$0xff]  ;;  %v199_v53 = vmax.f32 %v197_v39, %v178_v31  ;;  %v214_v54 = vmax.f32 %v212_v40, %v970_v32  ;;  %v283_v56 = vmax.f32 %v176_v25, %v184_v45  ;;  %v187_v57 = vld [vmem:[%s942_s23 + $0xd8] sm:$0xff] }
  0x3d   : > { %v244_v55 = vmax.f32 %v242_v35, %v243_v41  ;;  %v190_v58 = vld [vmem:[%s942_s23 + $0xf0] sm:$0xff]  ;;  %v200_v59 = vmax.f32 %v198_v46, %v180_v37  ;;  %v265_v61 = vmax.f32 %v262_v42, %v263_v48  ;;  %v284_v62 = vmax.f32 %v178_v31, %v186_v51  ;;  %v189_v63 = vld [vmem:[%s942_s23 + $0xe8] sm:$0xff]  ;;  %v191_v4 = vld [vmem:[%s942_s23 + $0xf8] sm:$0xff] }
  0x3e   : > { %v215_v60 = vmax.f32 %v213_v47, %v974_v38  ;;  %v201_v0 = vmax.f32 %v199_v53, %v182_v43  ;;  %v216_v1 = vmax.f32 %v214_v54, %v978_v44  ;;  %v285_v3 = vmax.f32 %v180_v37, %v188_v52  ;;  %v319_v21 = vld [vmem:[%s942_s23] sm:$0x1f]  ;;  %v320_v27 = vld [vmem:[%s942_s23 + $0x10] sm:$0x1f]  ;;  %v343_v46 = vld [vmem:[%s942_s23 + $0x5] sm:$0x3f] }
  0x3f   : > { %v245_v2 = vrot.slane %v244_v55, 4  ;;  %v202_v5 = vmax.f32 %v200_v59, %v184_v45  ;;  %v266_v7 = vmax.f32 %v264_v49, %v265_v61  ;;  %v286_v8 = vmax.f32 %v182_v43, %v190_v58  ;;  %v321_v33 = vld [vmem:[%s942_s23 + $0x20] sm:$0x1f]  ;;  %v322_v34 = vld [vmem:[%s942_s23 + $0x30] sm:$0x1f] }
  0x40   : > { %v217_v6 = vmax.f32 %v215_v60, %v185_v50  ;;  %v203_v9 = vmax.f32 %v201_v0, %v186_v51  ;;  %v218_v10 = vmax.f32 %v216_v1, %v187_v57  ;;  %v287_v12 = vmax.f32 %v283_v56, %v284_v62  ;;  %v323_v37 = vld [vmem:[%s942_s23 + $0x40] sm:$0x1f]  ;;  %v344_v47 = vld [vmem:[%s942_s23 + $0x15] sm:$0x3f] }
  0x41   : > { %v246_v11 = vmax.f32 %v244_v55, %v245_v2  ;;  %v204_v13 = vmax.f32 %v202_v5, %v188_v52  ;;  %v267_v15 = vrot.slane %v266_v7, 4  ;;  %v288_v16 = vmax.f32 %v285_v3, %v286_v8  ;;  %v345_v52 = vld [vmem:[%s942_s23 + $0x25] sm:$0x3f]  ;;  %v367_v3 = vld [vmem:[%s942_s23 + $0xb] sm:$0x1f] }
  0x42   : > { %v219_v14 = vmax.f32 %v217_v6, %v189_v63  ;;  %v205_v17 = vmax.f32 %v203_v9, %v190_v58  ;;  %v220_v18 = vmax.f32 %v218_v10, %v191_v4  ;;  %v305_v20 = vmax.f32 %v966_v26, %v185_v50  ;;  %v347_v58 = vld [vmem:[%s942_s23 + $0x45] sm:$0x3f]  ;;  %v369_v9 = vld [vmem:[%s942_s23 + $0x2b] sm:$0x1f] }
  0x43   : > { %v247_v19 = vrot.slane %v246_v11, 2  ;;  %v268_v22 = vmax.f32 %v266_v7, %v267_v15  ;;  %v289_v23 = vmax.f32 %v287_v12, %v288_v16  ;;  %v306_v24 = vmax.f32 %v970_v32, %v187_v57  ;;  %v346_v57 = vld [vmem:[%s942_s23 + $0x35] sm:$0x3f]  ;;  %v371_v15 = vld [vmem:[%s942_s23 + $0x4b] sm:$0x1f] }
  0x44   : > { %v307_v25 = vmax.f32 %v974_v38, %v189_v63  ;;  %v206_v28 = vmax.f32 %v204_v13, %v205_v17  ;;  %v221_v29 = vmax.f32 %v219_v14, %v220_v18  ;;  %v308_v31 = vmax.f32 %v978_v44, %v191_v4  ;;  %v368_v4 = vld [vmem:[%s942_s23 + $0x1b] sm:$0x1f] }
  0x45   : > { %v248_v30 = vmax.f32 %v246_v11, %v247_v19  ;;  %v269_v26 = vrot.slane %v268_v22, 2  ;;  %v290_v35 = vrot.slane %v289_v23, 4  ;;  %v309_v36 = vmax.f32 %v305_v20, %v306_v24  ;;  %v370_v14 = vld [vmem:[%s942_s23 + $0x3b] sm:$0x1f]  ;;  %v656_v20 = vld [vmem:[%s942_s23 + $0x50] sm:$0x1f] }
  0x46   : > { %v325_v39 = vsel %vm324_vm0, %v319_v21, -inf  ;;  %v222_v32 = vmax.f32 %v206_v28, %v221_v29  ;;  %v310_v40 = vmax.f32 %v307_v25, %v308_v31  ;;  %v326_v41 = vsel %vm324_vm0, %v320_v27, -inf  ;;  %v657_v25 = vld [vmem:[%s942_s23 + $0x60] sm:$0x1f]  ;;  %v658_v27 = vld [vmem:[%s942_s23 + $0x70] sm:$0x1f] }
  0x47   : > { %v249_v38 = vrot.slane %v248_v30, 1  ;;  %v270_v42 = vmax.f32 %v268_v22, %v269_v26  ;;  %v291_v43 = vmax.f32 %v289_v23, %v290_v35  ;;  %v327_v44 = vsel %vm324_vm0, %v321_v33, -inf  ;;  %v659_v33 = vld [vmem:[%s942_s23 + $0x80] sm:$0x1f] }
  0x48   : > { %v328_v45 = vsel %vm324_vm0, %v322_v34, -inf  ;;  %v223_v48 = vrot.slane %v222_v32, 4  ;;  %v311_v50 = vmax.f32 %v309_v36, %v310_v40  ;;  %v329_v51 = vsel %vm324_vm0, %v323_v37, -inf  ;;  %v660_v36 = vld [vmem:[%s942_s23 + $0x90] sm:$0x1f] }
  0x49   : > { %v250_v49 = vmax.f32 %v248_v30, %v249_v38  ;;  %v271_v53 = vrot.slane %v270_v42, 1  ;;  %v292_v54 = vrot.slane %v291_v43, 2  ;;  %v330_v55 = vmax.f32 %v325_v39, %v329_v51 }
  0x4a   : > { %v332_v56 = vmax.f32 %v327_v44, %v328_v45  ;;  %v224_v59 = vmax.f32 %v222_v32, %v223_v48  ;;  %v312_v60 = vrot.slane %v311_v50, 4  ;;  %v349_v61 = vsel %vm348_vm1, %v343_v46, -inf }
  0x4b   : > { %251 = vst [vmem:[%s1013_s25 + $0x1] sm:$0x1] %v250_v49  ;;  %v350_v62 = vsel %vm348_vm1, %v344_v47, -inf  ;;  %v272_v63 = vmax.f32 %v270_v42, %v271_v53  ;;  %v293_v0 = vmax.f32 %v291_v43, %v292_v54  ;;  %v331_v1 = vmax.f32 %v330_v55, %v326_v41  ;;  %v661_v41 = vld [vmem:[%s942_s23 + $0xa0] sm:$0x1f] }
  0x4c   : > { %v351_v2 = vsel %vm348_vm1, %v345_v52, -inf  ;;  %v225_v5 = vrot.slane %v224_v59, 2  ;;  %v313_v6 = vmax.f32 %v311_v50, %v312_v60  ;;  %v352_v7 = vsel %vm348_vm1, %v346_v57, -inf  ;;  %v662_v42 = vld [vmem:[%s942_s23 + $0x55] sm:$0x3f] }
  0x4d   : > { %v353_v8 = vsel %vm348_vm1, %v347_v58, -inf  ;;  %273 = vst [vmem:[%s1013_s25 + $0x2] sm:$0x1] %v272_v63  ;;  %v294_v10 = vrot.slane %v293_v0, 1  ;;  %v333_v11 = vmax.f32 %v331_v1, %v332_v56  ;;  %v356_v13 = vmax.f32 %v351_v2, %v352_v7  ;;  %v663_v47 = vld [vmem:[%s942_s23 + $0x65] sm:$0x3f] }
  0x4e   : > { %v354_v12 = vmax.f32 %v349_v61, %v353_v8  ;;  %v226_v16 = vmax.f32 %v224_v59, %v225_v5  ;;  %v314_v17 = vrot.slane %v313_v6, 2  ;;  %v372_v18 = vsel %vm324_vm0, %v367_v3, -inf  ;;  %v664_v52 = vld [vmem:[%s942_s23 + $0x75] sm:$0x3f]  ;;  %v665_v53 = vld [vmem:[%s942_s23 + $0x85] sm:$0x3f] }
  0x4f   : > { %v373_v19 = vsel %vm324_vm0, %v368_v4, -inf  ;;  %v295_v21 = vmax.f32 %v293_v0, %v294_v10  ;;  %v334_v22 = vsel %vm324_vm0, %v333_v11, -inf  ;;  %v374_v24 = vsel %vm324_vm0, %v369_v9, -inf  ;;  %v666_v57 = vld [vmem:[%s942_s23 + $0x95] sm:$0x3f] }
  0x50   : > { %v355_v23 = vmax.f32 %v354_v12, %v350_v62  ;;  %v227_v28 = vrot.slane %v226_v16, 1  ;;  %v315_v29 = vmax.f32 %v313_v6, %v314_v17  ;;  %v335_v30 = vrot.slane %v334_v22, 4  ;;  %v667_v63 = vld [vmem:[%s942_s23 + $0xa5] sm:$0x3f]  ;;  %v668_v4 = vld [vmem:[%s942_s23 + $0x5b] sm:$0x1f] }
  0x51   : > { %v375_v31 = vsel %vm324_vm0, %v370_v14, -inf  ;;  %296 = vst [vmem:[%s1013_s25 + $0x3] sm:$0x1] %v295_v21  ;;  %v376_v26 = vsel %vm324_vm0, %v371_v15, -inf  ;;  %v397_v37 = vsel %vm324_vm0, %v656_v20, -inf  ;;  %v398_v44 = vsel %vm324_vm0, %v657_v25, -inf }
  0x52   : > { %v357_v34 = vmax.f32 %v355_v23, %v356_v13  ;;  %v379_v35 = vmax.f32 %v374_v24, %v375_v31  ;;  %v228_v39 = vmax.f32 %v226_v16, %v227_v28  ;;  %v316_v32 = vrot.slane %v315_v29, 1  ;;  %v669_v9 = vld [vmem:[%s942_s23 + $0x6b] sm:$0x1f]  ;;  %v670_v14 = vld [vmem:[%s942_s23 + $0x7b] sm:$0x1f] }
  0x53   : > { %v336_v38 = vmax.f32 %v334_v22, %v335_v30  ;;  %v377_v40 = vmax.f32 %v372_v18, %v376_v26  ;;  %v399_v45 = vsel %vm324_vm0, %v658_v27, -inf  ;;  %v400_v46 = vsel %vm324_vm0, %v659_v33, -inf  ;;  %v672_v20 = vld [vmem:[%s942_s23 + $0x9b] sm:$0x1f]  ;;  %v673_v23 = vld [vmem:[%s942_s23 + $0xab] sm:$0x1f] }
  0x54   : > { %v358_v43 = vsel %vm348_vm1, %v357_v34, -inf  ;;  %229 = vst [vmem:[%s1013_s25] sm:$0x1] %v228_v39  ;;  %v317_v48 = vmax.f32 %v315_v29, %v316_v32  ;;  %v401_v54 = vsel %vm324_vm0, %v660_v36, -inf  ;;  %v403_v55 = vsel %vm324_vm0, %v661_v41, -inf  ;;  %v674_v31 = vld [vmem:[%s942_s23 + $0xb0] sm:$0x1f] }
  0x55   : > { %v337_v49 = vrot.slane %v336_v38, 2  ;;  %v359_v50 = vrot.slane %v358_v43, 4  ;;  %v378_v51 = vmax.f32 %v377_v40, %v373_v19  ;;  %v406_v56 = vmax.f32 %v399_v45, %v400_v46  ;;  %v671_v19 = vld [vmem:[%s942_s23 + $0x8b] sm:$0x1f]  ;;  %v676_v40 = vld [vmem:[%s942_s23 + $0xd0] sm:$0x1f] }
  0x56   : > { %v423_v58 = vsel %vm348_vm1, %v662_v42, -inf  ;;  %318 = vst [vmem:[%s1013_s25 + $0x4] sm:$0x1] %v317_v48  ;;  %v402_v62 = vmax.f32 %v397_v37, %v401_v54  ;;  %v404_v0 = vmax.f32 %v398_v44, %v403_v55  ;;  %v424_v1 = vsel %vm348_vm1, %v663_v47, -inf  ;;  %v677_v44 = vld [vmem:[%s942_s23 + $0xe0] sm:$0x1f] }
  0x57   : > { %v338_v59 = vmax.f32 %v336_v38, %v337_v49  ;;  %v360_v60 = vmax.f32 %v358_v43, %v359_v50  ;;  %v380_v61 = vmax.f32 %v378_v51, %v379_v35  ;;  %v425_v2 = vsel %vm348_vm1, %v664_v52, -inf  ;;  %v675_v38 = vld [vmem:[%s942_s23 + $0xc0] sm:$0x1f]  ;;  %v678_v45 = vld [vmem:[%s942_s23 + $0xf0] sm:$0x1f] }
  0x58   : > { %v426_v3 = vsel %vm348_vm1, %v665_v53, -inf  ;;  %v427_v8 = vsel %vm348_vm1, %v666_v57, -inf  ;;  %v405_v11 = vmax.f32 %v402_v62, %v404_v0  ;;  %v429_v13 = vsel %vm348_vm1, %v667_v63, -inf  ;;  %v679_v51 = vld [vmem:[%s942_s23 + $0xb5] sm:$0x3f] }
  0x59   : > { %v339_v5 = vrot.slane %v338_v59, 1  ;;  %v361_v6 = vrot.slane %v360_v60, 2  ;;  %v381_v7 = vsel %vm324_vm0, %v380_v61, -inf  ;;  %v428_v12 = vmax.f32 %v423_v58, %v427_v8  ;;  %v681_v61 = vld [vmem:[%s942_s23 + $0xd5] sm:$0x3f] }
  0x5a   : > { %v382_v10 = vrot.slane %v381_v7, 4  ;;  %v430_v17 = vmax.f32 %v424_v1, %v429_v13  ;;  %v432_v18 = vmax.f32 %v425_v2, %v426_v3  ;;  %v407_v22 = vmax.f32 %v405_v11, %v406_v56  ;;  %v680_v56 = vld [vmem:[%s942_s23 + $0xc5] sm:$0x3f]  ;;  %v683_v3 = vld [vmem:[%s942_s23 + $0xf5] sm:$0x3f] }
  0x5b   : > { %v340_v15 = vmax.f32 %v338_v59, %v339_v5  ;;  %v362_v16 = vmax.f32 %v360_v60, %v361_v6  ;;  %v448_v24 = vsel %vm324_vm0, %v668_v4, -inf  ;;  %v449_v25 = vsel %vm324_vm0, %v669_v9, -inf  ;;  %v682_v2 = vld [vmem:[%s942_s23 + $0xe5] sm:$0x3f]  ;;  %v684_v8 = vld [vmem:[%s942_s23 + $0xbb] sm:$0x1f] }
  0x5c   : > { %v383_v21 = vmax.f32 %v381_v7, %v382_v10  ;;  %v431_v29 = vmax.f32 %v428_v12, %v430_v17  ;;  %v450_v30 = vsel %vm324_vm0, %v670_v14, -inf  ;;  %v408_v34 = vsel %vm324_vm0, %v407_v22, -inf  ;;  %v685_v13 = vld [vmem:[%s942_s23 + $0xcb] sm:$0x1f]  ;;  %v686_v22 = vld [vmem:[%s942_s23 + $0xdb] sm:$0x1f] }
  0x5d   : > { %v341_v27 = vmax.f32 %v340_v15, 0.0  ;;  %v363_v28 = vrot.slane %v362_v16, 1  ;;  %v451_v26 = vsel %vm324_vm0, %v671_v19, -inf  ;;  %v452_v35 = vsel %vm324_vm0, %v672_v20, -inf }
  0x5e   : > { %v384_v33 = vrot.slane %v383_v21, 2  ;;  %v409_v37 = vrot.slane %v408_v34, 4  ;;  %v433_v39 = vmax.f32 %v431_v29, %v432_v18  ;;  %v453_v32 = vmax.f32 %v448_v24, %v452_v35 }
  0x5f   : > { %342 = vst [vmem:[%s1013_s25 + $0x5] sm:$0x1] %v341_v27  ;;  %v364_v36 = vmax.f32 %v362_v16, %v363_v28  ;;  %v454_v42 = vsel %vm324_vm0, %v673_v23, -inf  ;;  %v457_v43 = vmax.f32 %v450_v30, %v451_v26  ;;  %v474_v46 = vsel %vm324_vm0, %v674_v31, -inf  ;;  %v687_v23 = vld [vmem:[%s942_s23 + $0xeb] sm:$0x1f] }
  0x60   : > { %v385_v41 = vmax.f32 %v383_v21, %v384_v33  ;;  %v410_v48 = vmax.f32 %v408_v34, %v409_v37  ;;  %v434_v49 = vsel %vm348_vm1, %v433_v39, -inf  ;;  %v455_v50 = vmax.f32 %v449_v25, %v454_v42  ;;  %v688_v27 = vld [vmem:[%s942_s23 + $0xfb] sm:$0x1f] }
  0x61   : > { %v365_v47 = vmax.f32 %v364_v36, 0.0  ;;  %v435_v53 = vrot.slane %v434_v49, 4  ;;  %v475_v54 = vsel %vm324_vm0, %v675_v38, -inf  ;;  %v476_v55 = vsel %vm324_vm0, %v676_v40, -inf }
  0x62   : > { %v386_v52 = vrot.slane %v385_v41, 1  ;;  %v411_v57 = vrot.slane %v410_v48, 2  ;;  %v456_v58 = vmax.f32 %v453_v32, %v455_v50  ;;  %v477_v59 = vsel %vm324_vm0, %v677_v44, -inf }
  0x63   : > { %366 = vst [vmem:[%s1013_s25 + $0x6] sm:$0x1] %v365_v47  ;;  %v478_v60 = vsel %vm324_vm0, %v678_v45, -inf  ;;  %v436_v63 = vmax.f32 %v434_v49, %v435_v53  ;;  %v481_v1 = vmax.f32 %v476_v55, %v477_v59  ;;  %v497_v6 = vsel %vm348_vm1, %v679_v51, -inf }
  0x64   : > { %v387_v62 = vmax.f32 %v385_v41, %v386_v52  ;;  %v479_v0 = vmax.f32 %v474_v46, %v478_v60  ;;  %v412_v4 = vmax.f32 %v410_v48, %v411_v57  ;;  %v458_v5 = vmax.f32 %v456_v58, %v457_v43 }
  0x65   : > { %v498_v7 = vsel %vm348_vm1, %v680_v56, -inf  ;;  %v437_v10 = vrot.slane %v436_v63, 2  ;;  %v499_v12 = vsel %vm348_vm1, %v681_v61, -inf  ;;  %v500_v16 = vsel %vm348_vm1, %v682_v2, -inf }
  0x66   : > { %v388_v9 = vmax.f32 %v387_v62, 0.0  ;;  %v480_v11 = vmax.f32 %v479_v0, %v475_v54  ;;  %v413_v14 = vrot.slane %v412_v4, 1  ;;  %v459_v15 = vsel %vm324_vm0, %v458_v5, -inf }
  0x67   : > { %v501_v17 = vsel %vm348_vm1, %v683_v3, -inf  ;;  %v438_v18 = vmax.f32 %v436_v63, %v437_v10  ;;  %v460_v19 = vrot.slane %v459_v15, 4  ;;  %v504_v25 = vmax.f32 %v499_v12, %v500_v16 }
  0x68   : > { %389 = vst [vmem:[%s1013_s25 + $0x7] sm:$0x1] %v388_v9  ;;  %v482_v20 = vmax.f32 %v480_v11, %v481_v1  ;;  %v502_v21 = vmax.f32 %v497_v6, %v501_v17  ;;  %v414_v24 = vmax.f32 %v412_v4, %v413_v14  ;;  %v520_v28 = vsel %vm324_vm0, %v684_v8, -inf }
  0x69   : > { %v521_v29 = vsel %vm324_vm0, %v685_v13, -inf  ;;  %v439_v30 = vrot.slane %v438_v18, 1  ;;  %v461_v31 = vmax.f32 %v459_v15, %v460_v19  ;;  %v522_v36 = vsel %vm324_vm0, %v686_v22, -inf }
  0x6a   : > { %v483_v33 = vsel %vm324_vm0, %v482_v20, -inf  ;;  %v503_v34 = vmax.f32 %v502_v21, %v498_v7  ;;  %v415_v26 = vmax.f32 %v414_v24, 0.0  ;;  %v523_v37 = vsel %vm324_vm0, %v687_v23, -inf }
  0x6b   : > { %v484_v35 = vrot.slane %v483_v33, 4  ;;  %v440_v39 = vmax.f32 %v438_v18, %v439_v30  ;;  %v462_v32 = vrot.slane %v461_v31, 2  ;;  %v524_v40 = vsel %vm324_vm0, %v688_v27, -inf }
  0x6c   : > { %v505_v38 = vmax.f32 %v503_v34, %v504_v25  ;;  %416 = vst [vmem:[%s1013_s25 + $0x8] sm:$0x1] %v415_v26  ;;  %v525_v42 = vmax.f32 %v520_v28, %v524_v40  ;;  %v527_v43 = vmax.f32 %v522_v36, %v523_v37 }
  0x6d   : > { %v485_v41 = vmax.f32 %v483_v33, %v484_v35  ;;  %441 = vst [vmem:[%s1013_s25 + $0x9] sm:$0x1] %v440_v39  ;;  %v463_v44 = vmax.f32 %v461_v31, %v462_v32 }
  0x6e   : > { %v506_v45 = vsel %vm348_vm1, %v505_v38, -inf  ;;  %v526_v48 = vmax.f32 %v525_v42, %v521_v29 }
  0x6f   : > { %v486_v46 = vrot.slane %v485_v41, 2  ;;  %v507_v47 = vrot.slane %v506_v45, 4  ;;  %v464_v49 = vrot.slane %v463_v44, 1 }
  0x70   : > { %v528_v52 = vmax.f32 %v526_v48, %v527_v43 }
  0x71   : > { %v487_v50 = vmax.f32 %v485_v41, %v486_v46  ;;  %v508_v51 = vmax.f32 %v506_v45, %v507_v47  ;;  %v465_v53 = vmax.f32 %v463_v44, %v464_v49 }
  0x72   : > { %v529_v56 = vsel %vm324_vm0, %v528_v52, -inf }
  0x73   : > { %v488_v54 = vrot.slane %v487_v50, 1  ;;  %v509_v55 = vrot.slane %v508_v51, 2  ;;  %v466_v57 = vmax.f32 %v465_v53, 0.0  ;;  %v530_v58 = vrot.slane %v529_v56, 4 }
  0x75   : > { %v489_v59 = vmax.f32 %v487_v50, %v488_v54  ;;  %v510_v60 = vmax.f32 %v508_v51, %v509_v55  ;;  %467 = vst [vmem:[%s1013_s25 + $0xa] sm:$0x1] %v466_v57  ;;  %v531_v61 = vmax.f32 %v529_v56, %v530_v58 }
  0x77   : > { %v490_v62 = vmax.f32 %v489_v59, 0.0  ;;  %v511_v63 = vrot.slane %v510_v60, 1  ;;  %v532_v0 = vrot.slane %v531_v61, 2 }
  0x79   : > { %491 = vst [vmem:[%s1013_s25 + $0xb] sm:$0x1] %v490_v62  ;;  %v512_v1 = vmax.f32 %v510_v60, %v511_v63  ;;  %v533_v2 = vmax.f32 %v531_v61, %v532_v0 }
  0x7b   : > { %v513_v3 = vmax.f32 %v512_v1, 0.0  ;;  %v534_v4 = vrot.slane %v533_v2, 1 }
  0x7d   : > { %514 = vst [vmem:[%s1013_s25 + $0xc] sm:$0x1] %v513_v3  ;;  %v535_v5 = vmax.f32 %v533_v2, %v534_v4 }
  0x7f   : > { %v536_v6 = vmax.f32 %v535_v5, 0.0 }
  0x81   : > { %537 = vst [vmem:[%s1013_s25 + $0xd] sm:$0x1] %v536_v6 }
  0x82 PF: > { %s14_s11 = sadd.s32 1, %s830_s11   ;;  %s1150_s6 = smov %s814_s7 }
  0x83   : > { %p11_p9 = scmp.ge.s32.totalorder %s14_s11, 4   ;;  %s1151_s7 = smov %s818_s8 }
  0x84   : > { %s1152_s8 = smov %s894_s18  ;;  %s1153_s9 = smov %s826_s10 }
  0x85   : > { %s1154_s10 = smov %s1156_s13  ;;  %13 = sbr.rel (!%p11_p9) target bundleno = 4 (0x4), region = 67 }
  0x8c   :  { %565 = vsyncpa [#allocation3], 1 }
  0x8d   :  { %567 = vsyncpa [#allocation3 + $0x1], 1 }

</bundles_post_ra>
